<compile_context>
chip_gen: v7x
topology: tpu7x:2x2x1
jax: 0.10.0
libtpu: 0.0.40
codegen_flags: <defaults>
</compile_context>

<pallas_src>
import functools

import jax
import jax.numpy as jnp
from jax.experimental import pallas as pl
from jax.experimental.pallas import tpu as pltpu


def _round_up(a, b):
    return (a + b - 1) // b * b


def _shadow_mlp_kernel(x_ref, w1_ref, b1_ref, w2_ref, b2_ref, w3_ref, b3_ref,
                       ws_ref, bs_ref, o_ref):
    # x_ref : (in_dim, TILE)   feature-major input block (row 0 = shadow channel)
    # w1_ref: (W, in_dim)      W1^T padded with a zero column for the shadow row
    # w2_ref: (W, W)           W2^T
    # w3_ref: (4, W)           W3^T padded with a zero row (row 3)
    # b*_ref: column biases; ws/bs: (1,1) scalars in SMEM
    # o_ref : (4, TILE)        rows 0..2 = rgb, row 3 = shadow
    x = x_ref[...]

    # layer 1: Linear + ReLU (MXU, f32 accumulate); zero W1 column kills shadow row
    h = jnp.dot(w1_ref[...], x, preferred_element_type=jnp.float32) + b1_ref[...]
    h = jnp.maximum(h, 0.0)

    # layer 2: Linear + ReLU
    h = jnp.dot(w2_ref[...], h, preferred_element_type=jnp.float32) + b2_ref[...]
    h = jnp.maximum(h, 0.0)

    # output layer padded to 4 rows (row 3 is exactly 0 after this matmul)
    out = jnp.dot(w3_ref[...], h, preferred_element_type=jnp.float32) + b3_ref[...]

    # shadow head: Linear(1, 1) on the first input channel (VPU scalar*vector)
    shadow = x[0:1, :].astype(jnp.float32) * ws_ref[0, 0] + bs_ref[0, 0]

    # merge shadow into row 3 via one-hot select; single dense lane-wide store
    row = jax.lax.broadcasted_iota(jnp.int32, out.shape, 0)
    out = jnp.where(row == (out.shape[0] - 1), shadow, out)
    o_ref[...] = out.astype(o_ref.dtype)


@functools.partial(jax.jit, static_argnames=("tile",))
def shadow_v3_mlp(x, params, *, tile=2048):
    """x: (..., in_dim) float32.  Returns (..., 4) = [rgb, shadow]."""
    w1, b1, w2, b2, w3, b3, ws, bs = params
    in_dim = x.shape[-1]
    shadow_dim = ws.shape[0]
    # TODO(synk): shadow_dim > 1 would need a small matmul for the shadow head.
    assert shadow_dim == 1, "kernel specialized for the module default shadow_dim=1"
    feat_dim = in_dim - shadow_dim
    width = w1.shape[1]
    out_dim = 4

    lead_shape = x.shape[:-1]
    x2 = x.reshape(-1, in_dim)
    n = x2.shape[0]

    # Row tile: big enough to amortize per-step overhead, multiple of 128 lanes,
    # never larger than the (padded) problem.  Ragged N -> zero padding.
    n_block = min(tile, _round_up(max(n, 1), 128))
    n_pad = _round_up(max(n, 1), n_block)
    if n_pad != n:
        x2 = jnp.pad(x2, ((0, n_pad - n), (0, 0)))

    # Feature-major layout: rows on lanes (single XLA transpose pass).
    xT = x2.T                                            # (in_dim, n_pad)

    # One-time (fused) parameter re-layout for the transposed kernel.
    w1p = jnp.concatenate(
        [jnp.zeros((width, shadow_dim), w1.dtype), w1.T], axis=1)   # (W, in_dim)
    b1t = b1.reshape(width, 1)
    w2t = w2.T                                                      # (W, W)
    b2t = b2.reshape(width, 1)
    w3p = jnp.concatenate(
        [w3.T, jnp.zeros((1, width), w3.dtype)], axis=0)            # (4, W)
    b3t = jnp.concatenate(
        [b3.reshape(3, 1), jnp.zeros((1, 1), b3.dtype)], axis=0)    # (4, 1)
    ws2 = ws.reshape(1, 1)
    bs2 = bs.reshape(1, 1)

    full = lambda i: (0, 0)   # resident (untiled) weight blocks

    flops = 2 * n_pad * (feat_dim * width + width * width + width * out_dim)
    bytes_accessed = 4 * (n_pad * (in_dim + out_dim)
                          + width * (in_dim + width + out_dim + 2) + out_dim + 2)

    outT = pl.pallas_call(
        _shadow_mlp_kernel,
        out_shape=jax.ShapeDtypeStruct((out_dim, n_pad), x.dtype),
        grid=(n_pad // n_block,),
        in_specs=[
            pl.BlockSpec((in_dim, n_block), lambda i: (0, i)),
            pl.BlockSpec((width, in_dim), full),
            pl.BlockSpec((width, 1), full),
            pl.BlockSpec((width, width), full),
            pl.BlockSpec((width, 1), full),
            pl.BlockSpec((out_dim, width), full),
            pl.BlockSpec((out_dim, 1), full),
            pl.BlockSpec(memory_space=pltpu.MemorySpace.SMEM),
            pl.BlockSpec(memory_space=pltpu.MemorySpace.SMEM),
        ],
        out_specs=pl.BlockSpec((out_dim, n_block), lambda i: (0, i)),
        compiler_params=pltpu.CompilerParams(
            dimension_semantics=("parallel",)),
        cost_estimate=pl.CostEstimate(
            flops=flops, transcendentals=0, bytes_accessed=bytes_accessed),
    )(xT, w1p, b1t, w2t, b2t, w3p, b3t, ws2, bs2)

    out = outT[:, :n].T                                  # (n, 4)
    return out.reshape(*lead_shape, out_dim)


def init_params(key, in_dim=7, width=32, shadow_dim=1):
    """Deterministic synthetic init matching the module's parameter shapes."""
    feat_dim = in_dim - shadow_dim
    ks = jax.random.split(key, 6)
    scale = 0.1
    w1 = scale * jax.random.normal(ks[0], (feat_dim, width), jnp.float32)
    b1 = scale * jax.random.normal(ks[1], (1, width), jnp.float32)
    w2 = scale * jax.random.normal(ks[2], (width, width), jnp.float32)
    b2 = scale * jax.random.normal(ks[3], (1, width), jnp.float32)
    w3 = scale * jax.random.normal(ks[4], (width, 3), jnp.float32)
    b3 = jnp.zeros((1, 3), jnp.float32)            # nn.init.constant_(net[-1].bias, 0)
    ws = scale * jax.random.normal(ks[5], (shadow_dim, 1), jnp.float32)
    bs = jnp.zeros((1, 1), jnp.float32)            # nn.init.constant_(shadowNet.bias, 0)
    return (w1, b1, w2, b2, w3, b3, ws, bs)


def reference(x, params, shadow_dim=1):
    """Pure-JAX reference of the PyTorch forward for verification."""
    w1, b1, w2, b2, w3, b3, ws, bs = params
    xf = x[..., shadow_dim:]
    xs = x[..., :shadow_dim]
    h = jnp.maximum(xf @ w1 + b1, 0.0)
    h = jnp.maximum(h @ w2 + b2, 0.0)
    rgb = h @ w3 + b3
    shadow = xs @ ws + bs
    return jnp.concatenate([rgb, shadow], axis=-1)


if __name__ == "__main__":
    key = jax.random.PRNGKey(0)
    k_x, k_p, k_x2 = jax.random.split(key, 3)

    in_dim, width, shadow_dim = 7, 32, 1
    batch, rays = 2, 128                      # leading dims; flattened N = 256
    x = jax.random.normal(k_x, (batch, rays, in_dim), jnp.float32)
    params = init_params(k_p, in_dim=in_dim, width=width, shadow_dim=shadow_dim)

    out = jax.block_until_ready(shadow_v3_mlp(x, params))
    ref = reference(x, params, shadow_dim=shadow_dim)
    assert out.shape == (batch, rays, 4)
    assert jnp.allclose(out, ref, atol=1e-5, rtol=1e-5), "mismatch vs reference"

    # ragged row count (N=150, not a multiple of 128) -> exercises padded path
    x_r = jax.random.normal(k_x2, (3, 50, in_dim), jnp.float32)
    out_r = jax.block_until_ready(shadow_v3_mlp(x_r, params))
    ref_r = reference(x_r, params, shadow_dim=shadow_dim)
    assert out_r.shape == (3, 50, 4)
    assert jnp.allclose(out_r, ref_r, atol=1e-5, rtol=1e-5), "ragged mismatch"

    print("KERNEL_OK")
</pallas_src>

<mosaic_0001>
module attributes {stable_mosaic.version = 11 : i64} {
  func.func @_shadow_mlp_kernel(%arg0: i32, %arg1: memref<7x256xf32, #tpu.memory_space<vmem>>, %arg2: memref<32x7xf32, #tpu.memory_space<vmem>>, %arg3: memref<32x1xf32, #tpu.memory_space<vmem>>, %arg4: memref<32x32xf32, #tpu.memory_space<vmem>>, %arg5: memref<32x1xf32, #tpu.memory_space<vmem>>, %arg6: memref<4x32xf32, #tpu.memory_space<vmem>>, %arg7: memref<4x1xf32, #tpu.memory_space<vmem>>, %arg8: memref<1x1xf32, #tpu.memory_space<smem>>, %arg9: memref<1x1xf32, #tpu.memory_space<smem>>, %arg10: memref<4x256xf32, #tpu.memory_space<vmem>>) attributes {dimension_semantics = [#tpu.dimension_semantics<parallel>], iteration_bounds = array<i64: 1>, scalar_prefetch = 0 : i64, scratch_operands = 0 : i64, tpu.core_type = #tpu.core_type<tc>, window_params = [{transform_indices = @transform_0, window_bounds = array<i64: 7, 256>}, {pipeline_mode = #tpu.pipeline_mode<synchronous>, transform_indices = @transform_1, window_bounds = array<i64: 32, 7>}, {pipeline_mode = #tpu.pipeline_mode<synchronous>, transform_indices = @transform_2, window_bounds = array<i64: 32, 1>}, {pipeline_mode = #tpu.pipeline_mode<synchronous>, transform_indices = @transform_3, window_bounds = array<i64: 32, 32>}, {pipeline_mode = #tpu.pipeline_mode<synchronous>, transform_indices = @transform_4, window_bounds = array<i64: 32, 1>}, {pipeline_mode = #tpu.pipeline_mode<synchronous>, transform_indices = @transform_5, window_bounds = array<i64: 4, 32>}, {pipeline_mode = #tpu.pipeline_mode<synchronous>, transform_indices = @transform_6, window_bounds = array<i64: 4, 1>}, {transform_indices = @transform_7, window_bounds = array<i64: 1, 1>}, {transform_indices = @transform_8, window_bounds = array<i64: 1, 1>}, {transform_indices = @transform_9, window_bounds = array<i64: 4, 256>}]} {
    %c0 = arith.constant 0 : index
    %c0_0 = arith.constant 0 : index
    %0 = vector.load %arg1[%c0, %c0_0] : memref<7x256xf32, #tpu.memory_space<vmem>>, vector<7x256xf32>
    %c0_1 = arith.constant 0 : index
    %c0_2 = arith.constant 0 : index
    %1 = vector.load %arg2[%c0_1, %c0_2] : memref<32x7xf32, #tpu.memory_space<vmem>>, vector<32x7xf32>
    %cst = arith.constant dense<0.000000e+00> : vector<32x256xf32>
    %2 = tpu.matmul %1, %0, %cst {dimension_numbers = #tpu.dot_dimension_numbers<[1], [0], [0], [1], [0, 0, 1, 1], [], []>} : vector<32x7xf32>, vector<7x256xf32>, vector<32x256xf32> -> vector<32x256xf32>
    %c0_3 = arith.constant 0 : index
    %c0_4 = arith.constant 0 : index
    %3 = vector.load %arg3[%c0_3, %c0_4] : memref<32x1xf32, #tpu.memory_space<vmem>>, vector<32x1xf32>
    %4 = vector.broadcast %3 : vector<32x1xf32> to vector<32x256xf32>
    %5 = arith.addf %2, %4 : vector<32x256xf32>
    %cst_5 = arith.constant 0.000000e+00 : f32
    %6 = vector.broadcast %cst_5 : f32 to vector<32x256xf32>
    %7 = arith.maximumf %5, %6 : vector<32x256xf32>
    %c0_6 = arith.constant 0 : index
    %c0_7 = arith.constant 0 : index
    %8 = vector.load %arg4[%c0_6, %c0_7] : memref<32x32xf32, #tpu.memory_space<vmem>>, vector<32x32xf32>
    %cst_8 = arith.constant dense<0.000000e+00> : vector<32x256xf32>
    %9 = tpu.matmul %8, %7, %cst_8 {dimension_numbers = #tpu.dot_dimension_numbers<[1], [0], [0], [1], [0, 0, 1, 1], [], []>} : vector<32x32xf32>, vector<32x256xf32>, vector<32x256xf32> -> vector<32x256xf32>
    %c0_9 = arith.constant 0 : index
    %c0_10 = arith.constant 0 : index
    %10 = vector.load %arg5[%c0_9, %c0_10] : memref<32x1xf32, #tpu.memory_space<vmem>>, vector<32x1xf32>
    %11 = vector.broadcast %10 : vector<32x1xf32> to vector<32x256xf32>
    %12 = arith.addf %9, %11 : vector<32x256xf32>
    %cst_11 = arith.constant 0.000000e+00 : f32
    %13 = vector.broadcast %cst_11 : f32 to vector<32x256xf32>
    %14 = arith.maximumf %12, %13 : vector<32x256xf32>
    %c0_12 = arith.constant 0 : index
    %c0_13 = arith.constant 0 : index
    %15 = vector.load %arg6[%c0_12, %c0_13] : memref<4x32xf32, #tpu.memory_space<vmem>>, vector<4x32xf32>
    %cst_14 = arith.constant dense<0.000000e+00> : vector<4x256xf32>
    %16 = tpu.matmul %15, %14, %cst_14 {dimension_numbers = #tpu.dot_dimension_numbers<[1], [0], [0], [1], [0, 0, 1, 1], [], []>} : vector<4x32xf32>, vector<32x256xf32>, vector<4x256xf32> -> vector<4x256xf32>
    %c0_15 = arith.constant 0 : index
    %c0_16 = arith.constant 0 : index
    %17 = vector.load %arg7[%c0_15, %c0_16] : memref<4x1xf32, #tpu.memory_space<vmem>>, vector<4x1xf32>
    %18 = vector.broadcast %17 : vector<4x1xf32> to vector<4x256xf32>
    %19 = arith.addf %16, %18 : vector<4x256xf32>
    %20 = vector.extract_strided_slice %0 {offsets = [0, 0], sizes = [1, 256], strides = [1, 1]} : vector<7x256xf32> to vector<1x256xf32>
    %c0_17 = arith.constant 0 : index
    %c0_18 = arith.constant 0 : index
    %21 = memref.load %arg8[%c0_17, %c0_18] : memref<1x1xf32, #tpu.memory_space<smem>>
    %22 = vector.broadcast %21 : f32 to vector<1x256xf32>
    %23 = arith.mulf %20, %22 : vector<1x256xf32>
    %c0_19 = arith.constant 0 : index
    %c0_20 = arith.constant 0 : index
    %24 = memref.load %arg9[%c0_19, %c0_20] : memref<1x1xf32, #tpu.memory_space<smem>>
    %25 = vector.broadcast %24 : f32 to vector<1x256xf32>
    %26 = arith.addf %23, %25 : vector<1x256xf32>
    %27 = tpu.iota {dimensions = array<i32: 0>} : vector<4x256xi32>
    %c3_i32 = arith.constant 3 : i32
    %28 = vector.broadcast %c3_i32 : i32 to vector<4x256xi32>
    %29 = arith.cmpi eq, %27, %28 : vector<4x256xi32>
    %30 = vector.shape_cast %26 : vector<1x256xf32> to vector<1x256xf32>
    %31 = vector.broadcast %30 : vector<1x256xf32> to vector<4x256xf32>
    %32 = arith.select %29, %31, %19 : vector<4x256xi1>, vector<4x256xf32>
    %c0_21 = arith.constant 0 : index
    %c0_22 = arith.constant 0 : index
    %33 = vector.load %arg10[%c0_21, %c0_22] : memref<4x256xf32, #tpu.memory_space<vmem>>, vector<4x256xf32>
    tpu.vector_store %arg10[%c0_21, %c0_22], %32 {strides = array<i32>} : memref<4x256xf32, #tpu.memory_space<vmem>>, vector<4x256xf32>,
    return
  }
  func.func @transform_0(%arg0: i32) -> (i32, i32) {
    %c0_i32 = arith.constant 0 : i32
    %c0_i32_0 = arith.constant 0 : i32
    return %c0_i32, %arg0 : i32, i32
  }
  func.func @transform_1(%arg0: i32) -> (i32, i32) {
    %c0_i32 = arith.constant 0 : i32
    %c0_i32_0 = arith.constant 0 : i32
    %c0_i32_1 = arith.constant 0 : i32
    return %c0_i32, %c0_i32_0 : i32, i32
  }
  func.func @transform_2(%arg0: i32) -> (i32, i32) {
    %c0_i32 = arith.constant 0 : i32
    %c0_i32_0 = arith.constant 0 : i32
    %c0_i32_1 = arith.constant 0 : i32
    return %c0_i32, %c0_i32_0 : i32, i32
  }
  func.func @transform_3(%arg0: i32) -> (i32, i32) {
    %c0_i32 = arith.constant 0 : i32
    %c0_i32_0 = arith.constant 0 : i32
    %c0_i32_1 = arith.constant 0 : i32
    return %c0_i32, %c0_i32_0 : i32, i32
  }
  func.func @transform_4(%arg0: i32) -> (i32, i32) {
    %c0_i32 = arith.constant 0 : i32
    %c0_i32_0 = arith.constant 0 : i32
    %c0_i32_1 = arith.constant 0 : i32
    return %c0_i32, %c0_i32_0 : i32, i32
  }
  func.func @transform_5(%arg0: i32) -> (i32, i32) {
    %c0_i32 = arith.constant 0 : i32
    %c0_i32_0 = arith.constant 0 : i32
    %c0_i32_1 = arith.constant 0 : i32
    return %c0_i32, %c0_i32_0 : i32, i32
  }
  func.func @transform_6(%arg0: i32) -> (i32, i32) {
    %c0_i32 = arith.constant 0 : i32
    %c0_i32_0 = arith.constant 0 : i32
    %c0_i32_1 = arith.constant 0 : i32
    return %c0_i32, %c0_i32_0 : i32, i32
  }
  func.func @transform_7(%arg0: i32) -> (i32, i32) {
    %c0_i32 = arith.constant 0 : i32
    %c0_i32_0 = arith.constant 0 : i32
    %c0_i32_1 = arith.constant 0 : i32
    return %c0_i32, %c0_i32_0 : i32, i32
  }
  func.func @transform_8(%arg0: i32) -> (i32, i32) {
    %c0_i32 = arith.constant 0 : i32
    %c0_i32_0 = arith.constant 0 : i32
    %c0_i32_1 = arith.constant 0 : i32
    return %c0_i32, %c0_i32_0 : i32, i32
  }
  func.func @transform_9(%arg0: i32) -> (i32, i32) {
    %c0_i32 = arith.constant 0 : i32
    %c0_i32_0 = arith.constant 0 : i32
    return %c0_i32, %arg0 : i32, i32
  }
}

</mosaic_0001>

<bundles_post_ra>
// kernel: shadow_v3_mlp.1
= control target key start
LH: loop header
LB: loop body
LE: loop exit
PB: predicated region body
PF: predicated region fallthrough
CT: control target
= control target key end

     0   :  { %vm78_vm0 = vcmask 1046528   ;;  %vm65_vm1 = vcmask 56320   ;;  %v497_v3 = vmov 0.0   ;;  %v498_v5 = vmov 0   ;;  %s654_s0 = inlined_call_operand.vmem [shape: f32[7,256], index: 0, kind: input, shape index: {}]   ;;  %s655_s1 = inlined_call_operand.vmem [shape: f32[32,7], index: 1, kind: input, shape index: {}]   ;;  %s656_s2 = inlined_call_operand.vmem [shape: f32[32,1], index: 2, kind: input, shape index: {}]   ;;  %s657_s3 = inlined_call_operand.vmem [shape: f32[32,32], index: 3, kind: input, shape index: {}]   ;;  %s658_s4 = inlined_call_operand.vmem [shape: f32[32,1], index: 4, kind: input, shape index: {}]   ;;  %s659_s5 = inlined_call_operand.vmem [shape: f32[4,32], index: 5, kind: input, shape index: {}]   ;;  %s660_s6 = inlined_call_operand.vmem [shape: f32[4,1], index: 6, kind: input, shape index: {}]   ;;  %s661_s7 = inlined_call_operand.<no memory space> [shape: f32[1,1], index: 7, kind: input, shape index: {}]   ;;  %s662_s8 = inlined_call_operand.<no memory space> [shape: f32[1,1], index: 8, kind: input, shape index: {}]   ;;  %s663_s9 = inlined_call_operand.hbm [shape: f32[4,256], index: 9, kind: output, shape index: {}]  }
   0x1   :  { %v553_v0 = vld [vmem:[%s654_s0 + $0x8] sm:$0x7f]  ;;  %v558_v1 = vld [vmem:[%s654_s0] sm:$0x7f]  ;;  %149 = vmatprep.mubr.f32.mxu0 %v497_v3  ;;  %471 = vset.pattern.permute.xlu0 %v498_v5  ;;  %v43_v6 = vld [vmem:[%s656_s2 + $0x10] sm:$0xff] }
   0x2   :  { %441 = vmatprep.subr.msk.mxu0 %vm78_vm0, %v553_v0  ;;  %v37_v2 = vld [vmem:[%s655_s1] sm:$0xff]  ;;  %v38_v7 = vld [vmem:[%s655_s1 + $0x8] sm:$0xff]  ;;  %472 = vset.pattern.permute.xlu1 %v498_v5 }
   0x3   :  { %442 = vmatpush1.msk.msra.mxu0 %vm78_vm0, %v558_v1  ;;  %v41_v4 = vld [vmem:[%s656_s2] sm:$0xff]  ;;  %v42_v8 = vld [vmem:[%s656_s2 + $0x8] sm:$0xff]  ;;  %287 = vmatprep.mubr.f32.mxu1 %v497_v3 }
   0x4   :  { %443 = vmatmul.mubr.msk.f32.vlgmr.msra.gmra.mrb[0].mxu0 %vm65_vm1, %v37_v2  ;;  %47 = vperm.xlu0 %471, %v41_v4  }
   0x5   :  { %155 = vmatprep.mubr.f32.mxu0 %v497_v3 }
   0x6   :  { %16 = vsyncpa [#allocation5], 0  ;;  %57 = vperm.xlu1 %472, %v43_v6   ;;  %v44_v9 = vld [vmem:[%s656_s2 + $0x18] sm:$0xff]  ;;  %v39_v10 = vld [vmem:[%s655_s1 + $0x10] sm:$0xff]  ;;  %vm210_vm2 = vcmask 261120  }
   0x7   :  { %v186_v11 = vld [vmem:[%s658_s4] sm:$0xff]  ;;  %v187_v12 = vld [vmem:[%s658_s4 + $0x8] sm:$0xff]  ;;  %v40_v13 = vld [vmem:[%s655_s1 + $0x18] sm:$0xff] }
   0x8   :  { %444 = vmatmul.mubr.msk.f32.gmra.mrb[2].mxu0 %vm65_vm1, %v38_v7  ;;  %52 = vperm.xlu0 %471, %v42_v8   ;;  %v188_v14 = vld [vmem:[%s658_s4 + $0x10] sm:$0xff]  ;;  %v189_v15 = vld [vmem:[%s658_s4 + $0x18] sm:$0xff]  ;;  %v321_v16 = vld [vmem:[%s660_s6] sm:$0xf] }
   0x9   :  { %161 = vmatprep.mubr.f32.mxu0 %v497_v3  ;;  %v182_v49 = vld [vmem:[%s657_s3] sm:$0xff]  ;;  %v183_v50 = vld [vmem:[%s657_s3 + $0x8] sm:$0xff]  ;;  %v184_v51 = vld [vmem:[%s657_s3 + $0x10] sm:$0xff] }
   0xa   :  { %62 = vperm.xlu1 %472, %v44_v9   ;;  %v185_v52 = vld [vmem:[%s657_s3 + $0x18] sm:$0xff] }
   0xc   :  { %445 = vmatmul.mubr.msk.f32.gmra.mrb[4].mxu0 %vm65_vm1, %v39_v10  ;;  %192 = vperm.xlu0 %471, %v186_v11  }
   0xd   :  { %167 = vmatprep.mubr.f32.mxu0 %v497_v3 }
   0xe   :  { %197 = vperm.xlu1 %472, %v187_v12  }
  0x10   :  { %446 = vmatmul.mubr.msk.f32.gmra.mrb[6].mxu0 %vm65_vm1, %v40_v13  ;;  %202 = vperm.xlu0 %471, %v188_v14  }
  0x11   :  { %394 = vmatprep.mubr.f32.mxu0 %v497_v3 }
  0x12   :  { %207 = vperm.xlu1 %472, %v189_v15  }
  0x14   :  { %324 = vperm.xlu0 %471, %v321_v16  }
  0x83   :  { %v48_v17 = vpop.permute.xlu0 %47 }
  0x85   :  { %v58_v26 = vpop.permute.xlu1 %57 }
  0x87   :  { %v53_v21 = vpop.permute.xlu0 %52 }
  0x89   :  { %v63_v37 = vpop.permute.xlu1 %62 }
  0x8b   :  { %v193_v55 = vpop.permute.xlu0 %192 }
  0x8d   :  { %v198_v57 = vpop.permute.xlu1 %197 }
  0x8f   :  { %v203_v8 = vpop.permute.xlu0 %202 }
  0x91   :  { %v208_v11 = vpop.permute.xlu1 %207 }
  0xd7   :  { %v151_v18 = vpop.f32.mrb[0].mxu0 }
  0xd8   :  { %v153_v19 = vpop.f32.mrb[1].mxu0  ;;  %v152_v20 = vadd.f32 %v151_v18, %v48_v17 }
  0xd9   :  { %v154_v22 = vadd.f32 %v153_v19, %v48_v17 }
  0xda   :  { %v174_v28 = vmax.f32 %v152_v20, 0.0 }
  0xdb   :  { %v157_v23 = vpop.f32.mrb[2].mxu0  ;;  %v175_v30 = vmax.f32 %v154_v22, 0.0 }
  0xdc   :  { %v158_v24 = vadd.f32 %v157_v23, %v53_v21  ;;  %v159_v25 = vpop.f32.mrb[3].mxu0  ;;  %v320_v23 = vld [vmem:[%s659_s5] sm:$0xf]  ;;  %s499_s5 = smov [#allocation4]  }
  0xdd   :  { %v160_v27 = vadd.f32 %v159_v25, %v53_v21  ;;  %v402_v25 = vstv %s661_s7  ;;  %s433_s7 = sshll.u32 %s499_s5, 4  ;;  %s434_s7 = int_to_ptr.vmem [resolvable:$true] %s433_s7 }
  0xde   :  { %v176_v29 = vmax.f32 %v158_v24, 0.0  ;;  %v409_v24 = vlaneseq  ;;  %s473_s25 = scalar_lea.vmem %s434_s7, 128  ;;  %p478_p1 = scmp.lt.s32.totalorder %s434_s7, %s434_s7 }
  0xdf   :  { %v177_v31 = vmax.f32 %v160_v27, 0.0  ;;  %v163_v32 = vpop.f32.mrb[4].mxu0  ;;  %v403_v27 = vmul.f32 %v402_v25, %v558_v1  ;;  %p474_p0 = scmp.ne.s32.totalorder %s434_s7, %s473_s25  ;;  %p479_p2 = scmp.lt.s32.totalorder %s473_s25, %s473_s25 }
  0xe0   :  { %v165_v33 = vpop.f32.mrb[5].mxu0  ;;  %v454_v34 = vpack.c.bf16 %v176_v29, %v174_v28  ;;  %v164_v36 = vadd.f32 %v163_v32, %v58_v26  ;;  %v404_v28 = vmul.f32 %v402_v25, %v553_v0  ;;  %v406_v29 = vstv %s662_s8 }
  0xe1   :  { %v452_v35 = vpack.c.bf16 %v177_v31, %v175_v30  ;;  %v166_v38 = vadd.f32 %v165_v33, %v58_v26  ;;  %v410_v26 = vshrl.u32 %v409_v24, 7  ;;  %v407_v31 = vadd.f32 %v406_v29, %v403_v27  ;;  %p480_p3 = por %p479_p2, %p478_p1 }
  0xe2   :  { %v178_v43 = vmax.f32 %v164_v36, 0.0  ;;  %v408_v32 = vadd.f32 %v406_v29, %v404_v28 }
  0xe3   :  { %v169_v39 = vpop.f32.mrb[6].mxu0  ;;  %453 = vmatprep.subr.bf16.mxu1 %v452_v35  ;;  %v179_v45 = vmax.f32 %v166_v38, 0.0  ;;  %v414_v30 = vsub.s32 0, %v410_v26  ;;  %v325_v35 = vpop.permute.xlu0 %324  ;;  %vm411_vm3 = vcmp.eq.s32.totalorder %v410_v26, 3  ;;  %p481_p4 = pnand %p480_p3, %p474_p0 }
  0xe4   :  { %v170_v40 = vadd.f32 %v169_v39, %v63_v37  ;;  %v171_v41 = vpop.f32.mrb[7].mxu0  ;;  %455 = vmatpush1.bf16.msra.mxu1 %v454_v34 }
  0xe5   :  { %v172_v42 = vadd.f32 %v171_v41, %v63_v37  ;;  %v415_v33 = vrot.slane %v407_v31, %v414_v30  ;;  %v419_v34 = vrot.slane %v408_v32, %v414_v30 }
  0xe6   :  { %v180_v44 = vmax.f32 %v170_v40, 0.0 }
  0xe7   :  { %v181_v46 = vmax.f32 %v172_v42, 0.0 }
  0xe8   :  { %v458_v47 = vpack.c.bf16 %v180_v44, %v178_v43 }
  0xe9   :  { %v456_v48 = vpack.c.bf16 %v181_v46, %v179_v45 }
  0xeb   :  { %457 = vmatprep.subr.bf16.mxu1 %v456_v48 }
  0xec   :  { %459 = vmatpush1.bf16.msra.mxu1 %v458_v47 }
  0xef   :  { %447 = vmatmul.mubr.msk.f32.vlgmr.msra.gmra.mrb[0].mxu1 %vm210_vm2, %v182_v49 }
  0xf0   :  { %293 = vmatprep.mubr.f32.mxu1 %v497_v3 }
  0xf3   :  { %448 = vmatmul.mubr.msk.f32.gmra.mrb[2].mxu1 %vm210_vm2, %v183_v50 }
  0xf4   :  { %299 = vmatprep.mubr.f32.mxu1 %v497_v3 }
  0xf7   :  { %449 = vmatmul.mubr.msk.f32.gmra.mrb[4].mxu1 %vm210_vm2, %v184_v51 }
  0xf8   :  { %305 = vmatprep.mubr.f32.mxu1 %v497_v3 }
  0xfb   :  { %450 = vmatmul.mubr.msk.f32.gmra.mrb[6].mxu1 %vm210_vm2, %v185_v52 }
 0x1c2   :  { %v289_v53 = vpop.f32.mrb[0].mxu1 }
 0x1c3   :  { %v291_v54 = vpop.f32.mrb[1].mxu1  ;;  %v290_v56 = vadd.f32 %v289_v53, %v193_v55 }
 0x1c4   :  { %v292_v58 = vadd.f32 %v291_v54, %v193_v55 }
 0x1c5   :  { %v312_v63 = vmax.f32 %v290_v56, 0.0 }
 0x1c6   :  { %v295_v59 = vpop.f32.mrb[2].mxu1  ;;  %v313_v4 = vmax.f32 %v292_v58, 0.0 }
 0x1c7   :  { %v296_v60 = vadd.f32 %v295_v59, %v198_v57  ;;  %v297_v61 = vpop.f32.mrb[3].mxu1 }
 0x1c8   :  { %v298_v62 = vadd.f32 %v297_v61, %v198_v57 }
 0x1c9   :  { %v314_v2 = vmax.f32 %v296_v60, 0.0 }
 0x1ca   :  { %v315_v3 = vmax.f32 %v298_v62, 0.0  ;;  %v301_v5 = vpop.f32.mrb[4].mxu1 }
 0x1cb   :  { %v462_v6 = vpack.c.bf16 %v314_v2, %v312_v63  ;;  %v303_v7 = vpop.f32.mrb[5].mxu1  ;;  %v302_v10 = vadd.f32 %v301_v5, %v203_v8 }
 0x1cc   :  { %v460_v9 = vpack.c.bf16 %v315_v3, %v313_v4  ;;  %v304_v12 = vadd.f32 %v303_v7, %v203_v8 }
 0x1cd   :  { %v316_v17 = vmax.f32 %v302_v10, 0.0 }
 0x1ce   :  { %v307_v13 = vpop.f32.mrb[6].mxu1  ;;  %461 = vmatprep.subr.bf16.mxu0 %v460_v9  ;;  %v317_v19 = vmax.f32 %v304_v12, 0.0 }
 0x1cf   :  { %v308_v14 = vadd.f32 %v307_v13, %v208_v11  ;;  %v309_v15 = vpop.f32.mrb[7].mxu1  ;;  %463 = vmatpush1.bf16.msra.mxu0 %v462_v6 }
 0x1d0   :  { %v310_v16 = vadd.f32 %v309_v15, %v208_v11 }
 0x1d1   :  { %v318_v18 = vmax.f32 %v308_v14, 0.0 }
 0x1d2   :  { %v319_v20 = vmax.f32 %v310_v16, 0.0 }
 0x1d3   :  { %v466_v21 = vpack.c.bf16 %v318_v18, %v316_v17 }
 0x1d4   :  { %v464_v22 = vpack.c.bf16 %v319_v20, %v317_v19 }
 0x1d6   :  { %465 = vmatprep.subr.bf16.mxu0 %v464_v22 }
 0x1d7   :  { %467 = vmatpush1.bf16.msra.mxu0 %v466_v21 }
 0x1da   :  { %451 = vmatmul.mubr.msk.f32.vlgmr.msra.gmra.mrb[8].mxu0 %vm210_vm2, %v320_v23 }
 0x2ad   :  { %v396_v36 = vpop.f32.mrb[8].mxu0 }
 0x2ae   :  { %v397_v37 = vadd.f32 %v396_v36, %v325_v35  ;;  %v398_v38 = vpop.f32.mrb[9].mxu0 }
 0x2af   :  { %v399_v39 = vadd.f32 %v398_v38, %v325_v35 }
 0x2b0   :  { %v420_v1 = vsel %vm411_vm3, %v415_v33, %v397_v37 }
 0x2b1   :  { %v421_v40 = vsel %vm411_vm3, %v419_v34, %v399_v39 }
 0x2b2   :  { %v424_v0 = vcombine.low %v420_v1, %v421_v40 }
 0x2b4   :  { %426 = vst [vmem:[#allocation4] sm:$0xff] %v424_v0 }
 0x2b5   :  { %484 = shalt.err (!%p481_p4)
}
 0x2b6   :  { %s485_s27 = scalar_lea.hbm %s663_s9, 128 }
 0x2b7   :  { %p486_p5 = scmp.ne.s32.totalorder %s663_s9, %s485_s27  ;;  %p489_p6 = scmp.lt.u32.totalorder %s485_s27, %s663_s9 }
 0x2b9   :  { %p491_p7 = pnand %p489_p6, %p486_p5 }
 0x2bb   :  { %494 = shalt.err (!%p491_p7)
}
 0x2bc   :  { %436 = dma.vmem_to_hbm [thread:$0]  %s434_s7, 128, %s663_s9, [#allocation5]  }
 0x2bd   :  { %495 = dma.done.wait [#allocation5], 128  }
 0x2be   :  { %496 = vsyncadd [#allocation5], 4294967168 }
 0x2bf   :  { %440 = vsyncpa [#allocation5], 1 }

</bundles_post_ra>
